<compile_context>
chip_gen: v7x
topology: tpu7x:2x2x1
jax: 0.10.0
libtpu: 0.0.40
codegen_flags: <defaults>
</compile_context>

<pallas_src>
import functools

import jax
import jax.numpy as jnp
from jax.experimental import pallas as pl
from jax.experimental.pallas import tpu as pltpu

_NEG_BIG = -1e30  # "minus infinity" bias for padded vocab columns


# --------------------------------------------------------------------------
# Kernels
# --------------------------------------------------------------------------
def _lse_kernel(x_ref, w_ref, b_ref, lse_ref, m_sc, s_sc):
    """Two-pass path, pass 1: streaming logsumexp. grid = (M tiles, V tiles)."""
    j = pl.program_id(1)

    @pl.when(j == 0)
    def _():
        m_sc[...] = jnp.full_like(m_sc, -jnp.inf)
        s_sc[...] = jnp.zeros_like(s_sc)

    logits = jnp.dot(x_ref[...], w_ref[...],
                     preferred_element_type=jnp.float32) + b_ref[...]
    m_prev = m_sc[...]
    m_new = jnp.maximum(m_prev, jnp.max(logits, axis=-1, keepdims=True))
    s_sc[...] = (s_sc[...] * jnp.exp(m_prev - m_new)
                 + jnp.sum(jnp.exp(logits - m_new), axis=-1, keepdims=True))
    m_sc[...] = m_new

    @pl.when(j == pl.num_programs(1) - 1)
    def _():
        lse_ref[...] = m_sc[...] + jnp.log(s_sc[...])


def _normalize_kernel(x_ref, w_ref, b_ref, lse_ref, o_ref):
    """Two-pass path, pass 2: recompute logits tile, write logits - lse."""
    logits = jnp.dot(x_ref[...], w_ref[...],
                     preferred_element_type=jnp.float32) + b_ref[...]
    o_ref[...] = (logits - lse_ref[...]).astype(o_ref.dtype)


def _fused_kernel(x_ref, w_ref, b_ref, o_ref, m_sc, s_sc, logits_sc):
    """Single-pass fast path: keep the row-tile's logits resident in VMEM while
    streaming vocab tiles; emit normalized log-probs at the last vocab tile."""
    j = pl.program_id(1)
    tn = w_ref.shape[1]

    @pl.when(j == 0)
    def _():
        m_sc[...] = jnp.full_like(m_sc, -jnp.inf)
        s_sc[...] = jnp.zeros_like(s_sc)

    logits = jnp.dot(x_ref[...], w_ref[...],
                     preferred_element_type=jnp.float32) + b_ref[...]
    off = pl.multiple_of(j * tn, 128)          # tn is a multiple of 128
    logits_sc[:, pl.ds(off, tn)] = logits

    m_prev = m_sc[...]
    m_new = jnp.maximum(m_prev, jnp.max(logits, axis=-1, keepdims=True))
    s_sc[...] = (s_sc[...] * jnp.exp(m_prev - m_new)
                 + jnp.sum(jnp.exp(logits - m_new), axis=-1, keepdims=True))
    m_sc[...] = m_new

    @pl.when(j == pl.num_programs(1) - 1)
    def _():
        lse = m_sc[...] + jnp.log(s_sc[...])
        o_ref[...] = (logits_sc[...] - lse).astype(o_ref.dtype)


# --------------------------------------------------------------------------
# Helpers
# --------------------------------------------------------------------------
def _round_up(n, m):
    return (n + m - 1) // m * m


def _tpu_vmem_capacity():
    try:
        return int(pltpu.get_tpu_info().vmem_capacity_bytes)
    except Exception:
        return 64 << 20  # conservative: smallest per-TensorCore VMEM (v7x)


def _tpu_num_cores():
    try:
        info = pltpu.get_tpu_info()
        for attr in ("num_cores", "core_count", "num_tensorcores",
                     "tensor_core_count"):
            v = getattr(info, attr, None)
            if v:
                return int(v)
    except Exception:
        pass
    return 1


def _largest_div_mult(n, base, cap):
    """Largest multiple of `base` that divides `n` and is <= cap (>= base)."""
    best = base
    d = base
    limit = min(n, cap)
    while d <= limit:
        if n % d == 0:
            best = d
        d += base
    return best


def _vmem_limit(need_bytes, budget):
    # 1.5x headroom for compiler-internal scratch, floor 32 MiB, cap at the
    # generation-aware budget (never the full physical VMEM).
    return int(min(max(1.5 * need_bytes + (2 << 20), 32 << 20), budget))


# --------------------------------------------------------------------------
# One-time parameter packing (hoisted out of the per-step path)
# --------------------------------------------------------------------------
def prepare_projection_params(weight, bias, compute_dtype=jnp.bfloat16):
    """Transpose the nn.Linear weight to (d_model, vocab), cast to the MXU
    compute dtype and pad the vocab axis to a multiple of 128 (padded columns
    get a -1e30 bias so they never contribute to the softmax normalization).

    Do this ONCE per set of parameters; per-step calls then avoid re-reading
    and re-writing the whole LM-head weight in HBM."""
    vocab, _ = weight.shape
    v_pad = _round_up(vocab, 128)
    w_t = weight.T.astype(compute_dtype)                  # (d_model, vocab)
    b2d = bias.astype(jnp.float32).reshape(1, vocab)
    if v_pad != vocab:
        w_t = jnp.pad(w_t, ((0, 0), (0, v_pad - vocab)))
        b2d = jnp.pad(b2d, ((0, 0), (0, v_pad - vocab)),
                      constant_values=_NEG_BIG)
    return w_t, b2d


# --------------------------------------------------------------------------
# Jitted core
# --------------------------------------------------------------------------
@functools.partial(jax.jit, static_argnames=("vocab", "tm", "tn", "out_dtype",
                                             "single_pass"))
def project_logsoftmax(x, w_t, b2d, *, vocab, tm=None, tn=None,
                       out_dtype=None, single_pass=None):
    """log_softmax(x @ w_t + b, axis=-1) with w_t pre-packed (d_model, v_pad)."""
    batch, seq, d_model = x.shape
    v_pad = w_t.shape[1]
    compute_dtype = w_t.dtype
    if out_dtype is None:
        out_dtype = x.dtype
    M = batch * seq

    cbytes = jnp.dtype(compute_dtype).itemsize
    obytes = jnp.dtype(out_dtype).itemsize

    # ---- generation-aware tile defaults & VMEM budget ----------------------
    vmem_cap = _tpu_vmem_capacity()
    budget = max(min(int(vmem_cap * 0.85), vmem_cap - (8 << 20)), 32 << 20)
    big_vmem = vmem_cap >= (96 << 20)           # v5e/v6e: 128 MiB; v7x: 64 MiB
    if tm is None:
        tm = 1024 if big_vmem else 512          # rows: arithmetic-intensity knob
    if tn is None:
        tn = 1024 if big_vmem else 512

    # Vocab tile: multiple of 128 that divides v_pad -> no ragged vocab tile,
    # and when vocab % 128 == 0 no padding at all (final slice is a no-op).
    tn = _largest_div_mult(v_pad, 128, max(128, tn))

    # Row tile: clamp to the (8-padded) row count; on multi-core chips keep at
    # least two row tiles so megacore can split the 'parallel' axis.
    m8 = _round_up(M, 8)
    tm = min(_round_up(tm, 8), m8)
    if _tpu_num_cores() > 1 and m8 >= 16 and tm >= m8:
        tm = _round_up((m8 + 1) // 2, 8)

    def two_pass_bytes(tm_, tn_):
        # Double-buffered operands of the bigger (pass-2) call + scratch.
        return (2 * (tm_ * d_model * cbytes + d_model * tn_ * cbytes
                     + tn_ * 4 + tm_ * 4 + tm_ * tn_ * obytes) + 2 * tm_ * 4)

    # Shrink tiles until the streamed footprint fits the VMEM budget.
    # TODO(synk): for d_model >= ~16K add a K grid axis + f32 accumulator
    # instead of shrinking tm (full-K x tiles alone can exhaust v7x VMEM).
    while two_pass_bytes(tm, tn) > budget:
        if tn > 256:
            tn = _largest_div_mult(v_pad, 128, tn // 2)
        elif tm > 128:
            tm = max(8, _round_up(tm // 2, 8))
        elif tn > 128:
            tn = 128
        elif tm > 8:
            tm = max(8, _round_up(tm // 2, 8))
        else:
            break

    m_pad = _round_up(M, tm)
    num_m, num_n = m_pad // tm, v_pad // tn

    # ---- per-call input prep (weight was packed once, outside this path) ---
    x2d = x.reshape(M, d_model).astype(compute_dtype)
    if m_pad != M:
        x2d = jnp.pad(x2d, ((0, m_pad - M), (0, 0)))

    x_spec = pl.BlockSpec((tm, d_model), lambda i, j: (i, 0))
    w_spec = pl.BlockSpec((d_model, tn), lambda i, j: (0, j))
    b_spec = pl.BlockSpec((1, tn), lambda i, j: (0, j))
    lse_spec = pl.BlockSpec((tm, 1), lambda i, j: (i, 0))

    # ---- fast path: full row-tile of logits resident in VMEM ---------------
    fused_bytes = (2 * (tm * d_model * cbytes + d_model * tn * cbytes + tn * 4)
                   + 2 * tm * v_pad * obytes + tm * v_pad * 4 + 2 * tm * 4)
    use_fused = (fused_bytes <= budget) if single_pass is None else bool(single_pass)

    if use_fused:
        out2d = pl.pallas_call(
            _fused_kernel,
            out_shape=jax.ShapeDtypeStruct((m_pad, v_pad), out_dtype),
            grid_spec=pltpu.PrefetchScalarGridSpec(
                num_scalar_prefetch=0,
                grid=(num_m, num_n),
                in_specs=[x_spec, w_spec, b_spec],
                out_specs=pl.BlockSpec((tm, v_pad), lambda i, j: (i, 0)),
                scratch_shapes=[pltpu.VMEM((tm, 1), jnp.float32),
                                pltpu.VMEM((tm, 1), jnp.float32),
                                pltpu.VMEM((tm, v_pad), jnp.float32)],
            ),
            compiler_params=pltpu.CompilerParams(
                dimension_semantics=("parallel", "arbitrary"),
                vmem_limit_bytes=_vmem_limit(fused_bytes, budget),
            ),
        )(x2d, w_t, b2d)
    else:
        # ---- pass 1: streaming logsumexp over vocab tiles ------------------
        lse = pl.pallas_call(
            _lse_kernel,
            out_shape=jax.ShapeDtypeStruct((m_pad, 1), jnp.float32),
            grid_spec=pltpu.PrefetchScalarGridSpec(
                num_scalar_prefetch=0,
                grid=(num_m, num_n),
                in_specs=[x_spec, w_spec, b_spec],
                out_specs=lse_spec,
                scratch_shapes=[pltpu.VMEM((tm, 1), jnp.float32),
                                pltpu.VMEM((tm, 1), jnp.float32)],
            ),
            compiler_params=pltpu.CompilerParams(
                dimension_semantics=("parallel", "arbitrary"),
                vmem_limit_bytes=_vmem_limit(two_pass_bytes(tm, tn), budget),
            ),
        )(x2d, w_t, b2d)

        # ---- pass 2: recompute logits tile, write normalized log-probs -----
        # TODO(synk): on v5e, a variant that stores bf16 logits in pass 1 and
        # makes pass 2 a pure elementwise (logits - lse) would halve MXU work
        # at the cost of an (M, vocab) HBM intermediate.
        out2d = pl.pallas_call(
            _normalize_kernel,
            out_shape=jax.ShapeDtypeStruct((m_pad, v_pad), out_dtype),
            grid_spec=pltpu.PrefetchScalarGridSpec(
                num_scalar_prefetch=0,
                grid=(num_m, num_n),
                in_specs=[x_spec, w_spec, b_spec, lse_spec],
                out_specs=pl.BlockSpec((tm, tn), lambda i, j: (i, j)),
            ),
            compiler_params=pltpu.CompilerParams(
                dimension_semantics=("parallel", "parallel"),
                vmem_limit_bytes=_vmem_limit(two_pass_bytes(tm, tn), budget),
            ),
        )(x2d, w_t, b2d, lse)

    out2d = out2d[:M, :vocab]          # no-op when no padding was required
    return out2d.reshape(batch, seq, vocab)


# --------------------------------------------------------------------------
# Convenience wrapper matching the PyTorch module exactly
# --------------------------------------------------------------------------
def projection_layer(x, weight, bias, *, compute_dtype=jnp.bfloat16,
                     out_dtype=None, tm=None, tn=None, single_pass=None):
    """log_softmax(x @ weight.T + bias, axis=-1).

    x: (batch, seq, d_model); weight: (vocab, d_model); bias: (vocab,).
    For repeated calls, call prepare_projection_params() once and use
    project_logsoftmax() directly to avoid re-packing the weight each step."""
    w_t, b2d = prepare_projection_params(weight, bias, compute_dtype)
    return project_logsoftmax(x, w_t, b2d, vocab=weight.shape[0], tm=tm, tn=tn,
                              out_dtype=out_dtype, single_pass=single_pass)


# --------------------------------------------------------------------------
# Demo / self-check
# --------------------------------------------------------------------------
if __name__ == "__main__":
    batch, seq, d_model, vocab = 2, 8, 32, 100   # vocab=100 exercises padding

    key = jax.random.PRNGKey(0)
    kx, kw, kb = jax.random.split(key, 3)

    x = jax.random.normal(kx, (batch, seq, d_model), dtype=jnp.float32)
    bound = 1.0 / (d_model ** 0.5)
    weight = jax.random.uniform(kw, (vocab, d_model), jnp.float32, -bound, bound)
    bias = jax.random.uniform(kb, (vocab,), jnp.float32, -bound, bound)

    # References (the kernel matmul runs in bf16 by design).
    xb = x.astype(jnp.bfloat16).astype(jnp.float32)
    wb = weight.astype(jnp.bfloat16).astype(jnp.float32)
    ref_bf16 = jax.nn.log_softmax(xb @ wb.T + bias, axis=-1)
    ref_f32 = jax.nn.log_softmax(x @ weight.T + bias, axis=-1)

    # 1) Auto path (fast single-pass at these shapes), weight packed once.
    w_t, b2d = prepare_projection_params(weight, bias)
    out = project_logsoftmax(x, w_t, b2d, vocab=vocab)
    out = jax.block_until_ready(out)
    assert out.shape == (batch, seq, vocab)
    assert jnp.allclose(out, ref_bf16, atol=5e-3, rtol=5e-3), "fused vs bf16 ref"
    assert jnp.allclose(out, ref_f32, atol=5e-2, rtol=5e-2), "fused vs f32 ref"

    # 2) Forced two-pass streamed path (large-vocab fallback), via convenience API.
    out2 = projection_layer(x, weight, bias, single_pass=False)
    out2 = jax.block_until_ready(out2)
    assert jnp.allclose(out2, ref_bf16, atol=5e-3, rtol=5e-3), "two-pass vs bf16 ref"

    # 3) Fused path with multiple vocab tiles (exercises the dynamic-offset
    #    VMEM store), vocab=300 padded to 384 with tn=128 -> 3 vocab tiles.
    vocab3 = 300
    w3 = jax.random.uniform(kw, (vocab3, d_model), jnp.float32, -bound, bound)
    b3 = jax.random.uniform(kb, (vocab3,), jnp.float32, -bound, bound)
    out3 = projection_layer(x, w3, b3, tn=128, single_pass=True)
    out3 = jax.block_until_ready(out3)
    w3b = w3.astype(jnp.bfloat16).astype(jnp.float32)
    ref3 = jax.nn.log_softmax(xb @ w3b.T + b3, axis=-1)
    assert out3.shape == (batch, seq, vocab3)
    assert jnp.allclose(out3, ref3, atol=5e-3, rtol=5e-3), "multi-tile fused vs ref"

    print("KERNEL_OK")
</pallas_src>

<mosaic_0001>
module attributes {stable_mosaic.version = 11 : i64} {
  func.func @_fused_kernel(%arg0: i32, %arg1: i32, %arg2: memref<16x32xbf16, #tpu.memory_space<vmem>>, %arg3: memref<32x128xbf16, #tpu.memory_space<vmem>>, %arg4: memref<1x128xf32, #tpu.memory_space<vmem>>, %arg5: memref<16x128xf32, #tpu.memory_space<vmem>>, %arg6: memref<16x1xf32, #tpu.memory_space<vmem>>, %arg7: memref<16x1xf32, #tpu.memory_space<vmem>>, %arg8: memref<16x128xf32, #tpu.memory_space<vmem>>) attributes {dimension_semantics = [#tpu.dimension_semantics<parallel>, #tpu.dimension_semantics<arbitrary>], iteration_bounds = array<i64: 1, 1>, scalar_prefetch = 0 : i64, scratch_operands = 3 : i64, tpu.core_type = #tpu.core_type<tc>, window_params = [{transform_indices = @transform_0, window_bounds = array<i64: 16, 32>}, {transform_indices = @transform_1, window_bounds = array<i64: 32, 128>}, {transform_indices = @transform_2, window_bounds = array<i64: 1, 128>}, {transform_indices = @transform_3, window_bounds = array<i64: 16, 128>}]} {
    %c0_i32 = arith.constant 0 : i32
    %0 = arith.cmpi eq, %arg1, %c0_i32 : i32
    %1 = arith.extui %0 : i1 to i32
    %c0_i32_0 = arith.constant 0 : i32
    %2 = arith.cmpi ne, %1, %c0_i32_0 : i32
    scf.if %2 {
      %cst_19 = arith.constant 0xFF800000 : f32
      %32 = vector.broadcast %cst_19 : f32 to vector<16x1xf32>
      %c0_20 = arith.constant 0 : index
      %c0_21 = arith.constant 0 : index
      %33 = vector.load %arg6[%c0_20, %c0_21] : memref<16x1xf32, #tpu.memory_space<vmem>>, vector<16x1xf32>
      tpu.vector_store %arg6[%c0_20, %c0_21], %32 {strides = array<i32>} : memref<16x1xf32, #tpu.memory_space<vmem>>, vector<16x1xf32>,
      %cst_22 = arith.constant 0.000000e+00 : f32
      %34 = vector.broadcast %cst_22 : f32 to vector<16x1xf32>
      %c0_23 = arith.constant 0 : index
      %c0_24 = arith.constant 0 : index
      %35 = vector.load %arg7[%c0_23, %c0_24] : memref<16x1xf32, #tpu.memory_space<vmem>>, vector<16x1xf32>
      tpu.vector_store %arg7[%c0_23, %c0_24], %34 {strides = array<i32>} : memref<16x1xf32, #tpu.memory_space<vmem>>, vector<16x1xf32>,
    } else {
    }
    %c0 = arith.constant 0 : index
    %c0_1 = arith.constant 0 : index
    %3 = vector.load %arg2[%c0, %c0_1] : memref<16x32xbf16, #tpu.memory_space<vmem>>, vector<16x32xbf16>
    %c0_2 = arith.constant 0 : index
    %c0_3 = arith.constant 0 : index
    %4 = vector.load %arg3[%c0_2, %c0_3] : memref<32x128xbf16, #tpu.memory_space<vmem>>, vector<32x128xbf16>
    %cst = arith.constant dense<0.000000e+00> : vector<16x128xf32>
    %5 = tpu.matmul %3, %4, %cst {dimension_numbers = #tpu.dot_dimension_numbers<[1], [0], [0], [1], [0, 0, 1, 1], [], []>} : vector<16x32xbf16>, vector<32x128xbf16>, vector<16x128xf32> -> vector<16x128xf32>
    %c0_4 = arith.constant 0 : index
    %c0_5 = arith.constant 0 : index
    %6 = vector.load %arg4[%c0_4, %c0_5] : memref<1x128xf32, #tpu.memory_space<vmem>>, vector<1x128xf32>
    %7 = vector.broadcast %6 : vector<1x128xf32> to vector<16x128xf32>
    %8 = arith.addf %5, %7 : vector<16x128xf32>
    %c128_i32 = arith.constant 128 : i32
    %9 = arith.muli %arg1, %c128_i32 : i32
    %10 = tpu.assume_multiple %9, 128 : i32
    %c0_6 = arith.constant 0 : index
    %11 = arith.index_cast %10 : i32 to index
    %12 = vector.load %arg8[%c0_6, %11] : memref<16x128xf32, #tpu.memory_space<vmem>>, vector<16x128xf32>
    tpu.vector_store %arg8[%c0_6, %11], %8 {strides = array<i32>} : memref<16x128xf32, #tpu.memory_space<vmem>>, vector<16x128xf32>,
    %c0_7 = arith.constant 0 : index
    %c0_8 = arith.constant 0 : index
    %13 = vector.load %arg6[%c0_7, %c0_8] : memref<16x1xf32, #tpu.memory_space<vmem>>, vector<16x1xf32>
    %cst_9 = arith.constant dense<0xFF800000> : vector<16xf32>
    %14 = vector.multi_reduction <maximumf>, %8, %cst_9 [1] : vector<16x128xf32> to vector<16xf32>
    %15 = vector.shape_cast %14 : vector<16xf32> to vector<16x1xf32>
    %16 = arith.maximumf %13, %15 : vector<16x1xf32>
    %c0_10 = arith.constant 0 : index
    %c0_11 = arith.constant 0 : index
    %17 = vector.load %arg7[%c0_10, %c0_11] : memref<16x1xf32, #tpu.memory_space<vmem>>, vector<16x1xf32>
    %18 = arith.subf %13, %16 : vector<16x1xf32>
    %19 = math.exp %18 : vector<16x1xf32>
    %20 = arith.mulf %17, %19 : vector<16x1xf32>
    %21 = vector.broadcast %16 : vector<16x1xf32> to vector<16x128xf32>
    %22 = arith.subf %8, %21 : vector<16x128xf32>
    %23 = math.exp %22 : vector<16x128xf32>
    %cst_12 = arith.constant dense<0.000000e+00> : vector<16xf32>
    %24 = vector.multi_reduction <add>, %23, %cst_12 [1] : vector<16x128xf32> to vector<16xf32>
    %25 = vector.shape_cast %24 : vector<16xf32> to vector<16x1xf32>
    %26 = arith.addf %20, %25 : vector<16x1xf32>
    %c0_13 = arith.constant 0 : index
    %c0_14 = arith.constant 0 : index
    %27 = vector.load %arg7[%c0_13, %c0_14] : memref<16x1xf32, #tpu.memory_space<vmem>>, vector<16x1xf32>
    tpu.vector_store %arg7[%c0_13, %c0_14], %26 {strides = array<i32>} : memref<16x1xf32, #tpu.memory_space<vmem>>, vector<16x1xf32>,
    %c0_15 = arith.constant 0 : index
    %c0_16 = arith.constant 0 : index
    %28 = vector.load %arg6[%c0_15, %c0_16] : memref<16x1xf32, #tpu.memory_space<vmem>>, vector<16x1xf32>
    tpu.vector_store %arg6[%c0_15, %c0_16], %16 {strides = array<i32>} : memref<16x1xf32, #tpu.memory_space<vmem>>, vector<16x1xf32>,
    %c0_i32_17 = arith.constant 0 : i32
    %29 = arith.cmpi eq, %arg1, %c0_i32_17 : i32
    %30 = arith.extui %29 : i1 to i32
    %c0_i32_18 = arith.constant 0 : i32
    %31 = arith.cmpi ne, %30, %c0_i32_18 : i32
    scf.if %31 {
      %c0_19 = arith.constant 0 : index
      %c0_20 = arith.constant 0 : index
      %32 = vector.load %arg6[%c0_19, %c0_20] : memref<16x1xf32, #tpu.memory_space<vmem>>, vector<16x1xf32>
      %c0_21 = arith.constant 0 : index
      %c0_22 = arith.constant 0 : index
      %33 = vector.load %arg7[%c0_21, %c0_22] : memref<16x1xf32, #tpu.memory_space<vmem>>, vector<16x1xf32>
      %34 = math.log %33 : vector<16x1xf32>
      %35 = arith.addf %32, %34 : vector<16x1xf32>
      %c0_23 = arith.constant 0 : index
      %c0_24 = arith.constant 0 : index
      %36 = vector.load %arg8[%c0_23, %c0_24] : memref<16x128xf32, #tpu.memory_space<vmem>>, vector<16x128xf32>
      %37 = vector.broadcast %35 : vector<16x1xf32> to vector<16x128xf32>
      %38 = arith.subf %36, %37 : vector<16x128xf32>
      %c0_25 = arith.constant 0 : index
      %c0_26 = arith.constant 0 : index
      %39 = vector.load %arg5[%c0_25, %c0_26] : memref<16x128xf32, #tpu.memory_space<vmem>>, vector<16x128xf32>
      tpu.vector_store %arg5[%c0_25, %c0_26], %38 {strides = array<i32>} : memref<16x128xf32, #tpu.memory_space<vmem>>, vector<16x128xf32>,
    } else {
    }
    return
  }
  func.func @transform_0(%arg0: i32, %arg1: i32) -> (i32, i32) {
    %c0_i32 = arith.constant 0 : i32
    %c0_i32_0 = arith.constant 0 : i32
    return %arg0, %c0_i32 : i32, i32
  }
  func.func @transform_1(%arg0: i32, %arg1: i32) -> (i32, i32) {
    %c0_i32 = arith.constant 0 : i32
    %c0_i32_0 = arith.constant 0 : i32
    return %c0_i32, %arg1 : i32, i32
  }
  func.func @transform_2(%arg0: i32, %arg1: i32) -> (i32, i32) {
    %c0_i32 = arith.constant 0 : i32
    %c0_i32_0 = arith.constant 0 : i32
    return %c0_i32, %arg1 : i32, i32
  }
  func.func @transform_3(%arg0: i32, %arg1: i32) -> (i32, i32) {
    %c0_i32 = arith.constant 0 : i32
    %c0_i32_0 = arith.constant 0 : i32
    return %arg0, %c0_i32 : i32, i32
  }
}

</mosaic_0001>

<bundles_post_ra>
// kernel: project_logsoftmax.1
= control target key start
LH: loop header
LB: loop body
LE: loop exit
PB: predicated region body
PF: predicated region fallthrough
CT: control target
= control target key end

     0   :  { %v221_v0 = vmov 0.0   ;;  %vm222_vm0 = vmmov 0   ;;  %vm54_vm1 = vcmask 261120   ;;  %vm19_vm2 = vcmask 7168   ;;  %s281_s1 = inlined_call_operand.vmem [shape: bf16[32,128], index: 1, kind: input, shape index: {}]   ;;  %s282_s0 = inlined_call_operand.vmem [shape: bf16[16,32], index: 0, kind: input, shape index: {}]   ;;  %s283_s2 = inlined_call_operand.vmem [shape: f32[1,128], index: 2, kind: input, shape index: {}]   ;;  %s284_s3 = inlined_call_operand.vmem [shape: f32[16,128], index: 3, kind: output, shape index: {}]  }
   0x1   :  { %192 = vmatprep.subr.bf16.mxu0 %v221_v0  ;;  %v206_v1 = vld [vmem:[%s281_s1] sm:$0xff]   ;;  %196 = vmatprep.mubr.msk.bf16.mxu0 %vm222_vm0, %v221_v0  ;;  %v207_v2 = vld [vmem:[%s281_s1 + $0x8] sm:$0xff]   ;;  %v223_v4 = vmov -inf   ;;  %22 = vst.msk [vmem:[#allocation3] sm:$0xff] %vm19_vm2, %v221_v0  ;;  %23 = vst.msk [vmem:[#allocation3 + $0x8] sm:$0xff] %vm19_vm2, %v221_v0  ;;  %v224_v12 = vmov 0  }
   0x2   :  { %193 = vmatpush3.bf16.msra.mxu0 %v206_v1  ;;  %v208_v3 = vld [vmem:[%s282_s0] sm:$0xff]   ;;  %20 = vst.msk [vmem:[#allocation2] sm:$0xff] %vm19_vm2, %v223_v4  ;;  %21 = vst.msk [vmem:[#allocation2 + $0x8] sm:$0xff] %vm19_vm2, %v223_v4  ;;  %204 = vset.pattern.permute.xlu1 %v224_v12 }
   0x3   :  { %194 = vmatprep.subr.bf16.mxu0 %v221_v0  ;;  %v184_v5 = vld [vmem:[%s283_s2] ss:$0 sm:$0xff]  ;;  %205 = vset.pattern.permute.xlu0 %v224_v12 }
   0x6   :  { %195 = vmatpush3.bf16.msra.mxu0 %v207_v2 }
   0x8   :  { %v113_v32 = vld [vmem:[#allocation3] sm:$0xff]  ;;  %v114_v36 = vld [vmem:[#allocation3 + $0x8] sm:$0xff] }
   0x9   :  { %197 = vmatmul.mubr.msk.bf16.vlgmr.msra.gmra.mrb[0].mxu0 %vm54_vm1, %v208_v3  ;;  %v105_v13 = vld [vmem:[#allocation2] sm:$0xff]  ;;  %v106_v16 = vld [vmem:[#allocation2 + $0x8] sm:$0xff] }
  0xdc   :  { %v92_v6 = vpop.f32.mrb[0].mxu0 }
  0xdd   :  { %v261_v7 = vadd.f32 %v184_v5, %v92_v6  ;;  %v198_v8 = vpop.f32.mrb[1].mxu0 }
  0xde   :  { %v95_v9 = vpop.f32.mrb[2].mxu0 }
  0xdf   :  { %107 = vmax.xlane.f32.xlu0 %v261_v7  ;;  %v199_v10 = vpop.f32.mrb[3].mxu0  ;;  %v264_v11 = vadd.f32 %v184_v5, %v95_v9 }
  0xe3   :  { %109 = vmax.xlane.f32.xlu0 %v264_v11 }
 0x16c   :  { %v108_v14 = vpop.xlane.xlu0 %107 }
 0x16d   :  { %v111_v15 = vmax.f32 %v105_v13, %v108_v14 }
 0x16f   :  { %v115_v17 = vsub.f32 %v105_v13, %v111_v15  ;;  %148 = vst.msk [vmem:[#allocation2] sm:$0xff] %vm19_vm2, %v111_v15  ;;  %125 = vperm.xlu1 %204, %v111_v15  }
 0x170   :  { %v110_v18 = vpop.xlane.xlu0 %109 }
 0x171   :  { %v112_v19 = vmax.f32 %v106_v16, %v110_v18  ;;  %v117_v29 = vmul.f32 1.442695, %v115_v17 }
 0x173   :  { %v116_v20 = vsub.f32 %v106_v16, %v112_v19  ;;  %149 = vst.msk [vmem:[#allocation2 + $0x8] sm:$0xff] %vm19_vm2, %v112_v19  ;;  %130 = vperm.xlu1 %204, %v112_v19  }
 0x175   :  { %v119_v30 = vmul.f32 1.442695, %v116_v20 }
 0x176   :  { %v153_v45 = vld [vmem:[#allocation2] sm:$0xff] }
 0x17a   :  { %v154_v49 = vld [vmem:[#allocation2 + $0x8] sm:$0xff] }
 0x1ee   :  { %v126_v21 = vpop.permute.xlu1 %125 }
 0x1ef   :  { %v133_v22 = vsub.f32 %v261_v7, %v126_v21 }
 0x1f1   :  { %v135_v23 = vmul.f32 1.442695, %v133_v22 }
 0x1f2   :  { %v131_v24 = vpop.permute.xlu1 %130 }
 0x1f3   :  { %209 = vpow2.f32 %v135_v23  ;;  %v134_v25 = vsub.f32 %v264_v11, %v131_v24 }
 0x1f5   :  { %v137_v26 = vmul.f32 1.442695, %v134_v25 }
 0x1f7   :  { %211 = vpow2.f32 %v137_v26 }
 0x1f8   :  { %213 = vpow2.f32 %v117_v29 }
 0x1f9   :  { %215 = vpow2.f32 %v119_v30 }
 0x1fd   :  { %v210_v27 = vpop.eup %209 }
 0x1fe   :  { %139 = vadd.xlane.f32.xlu0 %v210_v27 }
 0x201   :  { %v212_v28 = vpop.eup %211 }
 0x202   :  { %141 = vadd.xlane.f32.xlu1 %v212_v28  ;;  %v214_v31 = vpop.eup %213 }
 0x203   :  { %v121_v33 = vmul.f32 %v214_v31, %v113_v32  ;;  %v216_v34 = vpop.eup %215 }
 0x204   :  { %v122_v38 = vmul.f32 %v216_v34, %v114_v36 }
 0x28b   :  { %v140_v35 = vpop.xlane.xlu0 %139 }
 0x28c   :  { %v143_v37 = vadd.f32 %v140_v35, %v121_v33 }
 0x28e   :  { %146 = vst.msk [vmem:[#allocation3] sm:$0xff] %vm19_vm2, %v143_v37 }
 0x28f   :  { %v142_v39 = vpop.xlane.xlu1 %141 }
 0x290   :  { %v144_v40 = vadd.f32 %v142_v39, %v122_v38 }
 0x292   :  { %147 = vst.msk [vmem:[#allocation3 + $0x8] sm:$0xff] %vm19_vm2, %v144_v40 }
 0x295   :  { %v155_v41 = vld [vmem:[#allocation3] sm:$0xff] }
 0x296   :  { %217 = vlog2.f32 %v155_v41 }
 0x299   :  { %v156_v42 = vld [vmem:[#allocation3 + $0x8] sm:$0xff] }
 0x29a   :  { %219 = vlog2.f32 %v156_v42 }
 0x2a0   :  { %v218_v43 = vpop.eup %217 }
 0x2a1   :  { %v158_v44 = vmul.f32 0.6931472, %v218_v43 }
 0x2a3   :  { %v161_v46 = vadd.f32 %v158_v44, %v153_v45 }
 0x2a4   :  { %v220_v47 = vpop.eup %219 }
 0x2a5   :  { %167 = vperm.xlu0 %205, %v161_v46   ;;  %v160_v48 = vmul.f32 0.6931472, %v220_v47 }
 0x2a7   :  { %v162_v50 = vadd.f32 %v160_v48, %v154_v49 }
 0x2a9   :  { %172 = vperm.xlu1 %204, %v162_v50  }
 0x324   :  { %v168_v51 = vpop.permute.xlu0 %167 }
 0x325   :  { %v175_v52 = vsub.f32 %v261_v7, %v168_v51 }
 0x327   :  { %177 = vst [vmem:[%s284_s3] sm:$0xff] %v175_v52 }
 0x328   :  { %v173_v53 = vpop.permute.xlu1 %172 }
 0x329   :  { %v176_v54 = vsub.f32 %v264_v11, %v173_v53 }
 0x32b   :  { %178 = vst [vmem:[%s284_s3 + $0x8] sm:$0xff] %v176_v54 }

</bundles_post_ra>
